<compile_context>
chip_gen: v5e
topology: v5e:2x2
jax: 0.10.0
libtpu: 0.0.40
codegen_flags: <defaults>
</compile_context>

<pallas_src>
import functools

import jax
import jax.numpy as jnp
import numpy as np
from jax.experimental import pallas as pl
from jax.experimental.pallas import tpu as pltpu

_LANE = 128
_SUB = 8


def _focal_loss_kernel(logit_ref, target_ref, out_ref, acc_ref, *,
                       gamma, smooth, final_scale, hw_valid, tile_cols,
                       needs_mask, alpha_vals):
    n = pl.program_id(0)
    t = pl.program_id(1)

    @pl.when(jnp.logical_and(n == 0, t == 0))
    def _():
        acc_ref[...] = jnp.zeros_like(acc_ref)

    logit = logit_ref[0].astype(jnp.float32)          # (C, S, 128)
    tgt = target_ref[0]                               # (S, 128) int32
    num_class = logit.shape[0]

    # one-hot mask without materializing a clipped one-hot matrix
    class_ids = jax.lax.broadcasted_iota(jnp.int32, logit.shape, 0)
    is_tgt = class_ids == tgt[None, :, :]             # (C, S, 128)

    # folded label smoothing:
    #   pt = hi*p_tgt + lo*(sum - p_tgt) + smooth = (hi-lo)*p_tgt + lo*sum + smooth
    p_tgt = jnp.sum(jnp.where(is_tgt, logit, 0.0), axis=0)   # (S, 128)
    p_sum = jnp.sum(logit, axis=0)                            # (S, 128)

    lo = smooth / (num_class - 1)
    hi = 1.0 - smooth
    pt = (hi - lo) * p_tgt + lo * p_sum + smooth              # (S, 128)
    logpt = jnp.log(pt)                                       # dense EUP op
    om = 1.0 - pt

    g_int = int(round(gamma))
    if abs(float(gamma) - g_int) < 1e-12 and g_int >= 0:
        # integer gamma (the common gamma=2): two VPU multiplies, no exp/log
        focal = jnp.ones_like(om)
        for _ in range(g_int):
            focal = focal * om
    else:
        focal = jnp.power(om, gamma)

    loss = -(focal * logpt)                                   # (S, 128)

    if alpha_vals is not None:
        alpha_c = jnp.asarray(alpha_vals, jnp.float32).reshape(num_class, 1, 1)
        alpha_t = jnp.sum(jnp.where(is_tgt, alpha_c, 0.0), axis=0)
        loss = loss * alpha_t
    # alpha=None path: alpha_t == 1 everywhere -> gather elided.

    if needs_mask:
        # mask out padded pixels (HW not a multiple of the tile)
        sub = jax.lax.broadcasted_iota(jnp.int32, loss.shape, 0)
        lane = jax.lax.broadcasted_iota(jnp.int32, loss.shape, 1)
        flat = t * tile_cols + sub * _LANE + lane
        loss = jnp.where(flat < hw_valid, loss, 0.0)

    # dense partial accumulation; full reduce only in the epilogue
    acc_ref[...] = acc_ref[...] + loss

    @pl.when(jnp.logical_and(n == pl.num_programs(0) - 1,
                             t == pl.num_programs(1) - 1))
    def _():
        out_ref[...] = jnp.sum(acc_ref[...], keepdims=True) * final_scale


def _pick_tile(hw, num_class, budget_bytes=8 * 1024 * 1024):
    """Pick the sublane tile S and padded HW so one (logits+targets) buffer
    stays under ~budget_bytes (double-buffered ~2x, comfortably within the
    32 MiB scoped VMEM that exists on all of v5e/v6e/v7x)."""
    hw128 = -(-hw // _LANE)
    s_cap = max(_SUB, budget_bytes // ((num_class + 1) * _LANE * 4))
    if hw128 <= s_cap:
        return hw128, hw128 * _LANE                 # single t-tile, full extent
    s = (s_cap // _SUB) * _SUB
    for cand in range(s, _SUB - 1, -_SUB):          # prefer exact divisor (no pad)
        if hw128 % cand == 0:
            return cand, hw128 * _LANE
    hwp128 = -(-hw128 // s) * s
    return s, hwp128 * _LANE


def focal_loss(logit_nchw, target, *, alpha=None, gamma=2.0, balance_index=0,
               smooth=1e-5, size_average=True):
    """Matches FocalLoss.forward (apply_nonlin=None). logit_nchw: (N,C,H,W)
    probabilities; target: (N,1,H,W) int class ids."""
    N, C = int(logit_nchw.shape[0]), int(logit_nchw.shape[1])
    HW = int(np.prod(logit_nchw.shape[2:]))

    # contiguous reshapes only — no transpose, no extra HBM pass
    logit3 = logit_nchw.reshape(N, C, HW)
    tgt2 = target.reshape(N, HW).astype(jnp.int32)

    # resolve alpha exactly like the PyTorch module, baked as static constants
    if alpha is None:
        alpha_vals = None
    elif isinstance(alpha, (list, tuple, np.ndarray)):
        a = np.asarray(alpha, np.float32).reshape(-1)
        assert a.size == C
        a = a / a.sum()
        alpha_vals = tuple(float(v) for v in a)
    elif isinstance(alpha, float):
        a = np.full((C,), 1.0 - alpha, np.float32)
        a[balance_index] = alpha
        alpha_vals = tuple(float(v) for v in a)
    else:
        raise TypeError('Not support alpha type')

    S, HWp = _pick_tile(HW, C)
    if HWp != HW:
        # TODO(synk): pad copies the tensor once; only hit when HW has no
        # 128-aligned tiling — in-kernel mask keeps the result exact.
        logit3 = jnp.pad(logit3, ((0, 0), (0, 0), (0, HWp - HW)))
        tgt2 = jnp.pad(tgt2, ((0, 0), (0, HWp - HW)))
    hwp128 = HWp // _LANE
    logit4 = logit3.reshape(N, C, hwp128, _LANE)
    tgt3 = tgt2.reshape(N, hwp128, _LANE)
    n_t = hwp128 // S

    M = N * HW
    final_scale = (1.0 / M) if size_average else 1.0

    kernel = functools.partial(
        _focal_loss_kernel,
        gamma=float(gamma),
        smooth=float(smooth),
        final_scale=float(final_scale),
        hw_valid=int(HW),
        tile_cols=int(S * _LANE),
        needs_mask=(HWp != HW),
        alpha_vals=alpha_vals,
    )

    out = pl.pallas_call(
        kernel,
        out_shape=jax.ShapeDtypeStruct((1, 1), jnp.float32),
        grid_spec=pltpu.PrefetchScalarGridSpec(
            num_scalar_prefetch=0,
            grid=(N, n_t),
            in_specs=[
                pl.BlockSpec((1, C, S, _LANE), lambda n, t: (n, 0, t, 0)),  # logits
                pl.BlockSpec((1, S, _LANE), lambda n, t: (n, t, 0)),        # targets
            ],
            out_specs=pl.BlockSpec((1, 1), lambda n, t: (0, 0)),
            scratch_shapes=[pltpu.VMEM((S, _LANE), jnp.float32)],
        ),
        compiler_params=pltpu.CompilerParams(
            dimension_semantics=("arbitrary", "arbitrary"),
            vmem_limit_bytes=32 * 1024 * 1024,
        ),
    )(logit4, tgt3)
    return out[0, 0]


def _focal_loss_ref(logit_nchw, target, *, gamma=2.0, smooth=1e-5):
    """Pure-JAX reference mirroring the PyTorch forward (alpha=None)."""
    N, C = logit_nchw.shape[0], logit_nchw.shape[1]
    logit2d = jnp.transpose(logit_nchw.reshape(N, C, -1), (0, 2, 1)).reshape(-1, C)
    tgt = jnp.squeeze(target, axis=1).reshape(-1).astype(jnp.int32)
    one_hot = jax.nn.one_hot(tgt, C, dtype=jnp.float32)
    one_hot = jnp.clip(one_hot, smooth / (C - 1), 1.0 - smooth)
    pt = jnp.sum(one_hot * logit2d, axis=1) + smooth
    logpt = jnp.log(pt)
    loss = -jnp.power(1.0 - pt, gamma) * logpt
    return jnp.mean(loss)


if __name__ == "__main__":
    key = jax.random.PRNGKey(0)
    k1, k2 = jax.random.split(key)

    N, C, H, W = 2, 4, 16, 16
    # FocalLoss with apply_nonlin=None expects probabilities; build them via
    # softmax over the class axis of random logits (deterministic).
    raw = jax.random.normal(k1, (N, C, H, W), dtype=jnp.float32)
    probs = jax.nn.softmax(raw, axis=1)
    target = jax.random.randint(k2, (N, 1, H, W), 0, C, dtype=jnp.int32)

    loss_fn = jax.jit(lambda p, t: focal_loss(p, t, gamma=2.0, smooth=1e-5,
                                              size_average=True))
    loss = jax.block_until_ready(loss_fn(probs, target))

    ref = jax.block_until_ready(_focal_loss_ref(probs, target, gamma=2.0, smooth=1e-5))
    assert np.allclose(np.asarray(loss), np.asarray(ref), rtol=1e-4, atol=1e-5), (loss, ref)

    print("KERNEL_OK")
</pallas_src>

<mosaic_0001>
module attributes {stable_mosaic.version = 11 : i64} {
  func.func @_focal_loss_kernel(%arg0: i32, %arg1: i32, %arg2: memref<1x4x2x128xf32, #tpu.memory_space<vmem>>, %arg3: memref<1x2x128xi32, #tpu.memory_space<vmem>>, %arg4: memref<1x1xf32, #tpu.memory_space<vmem>>, %arg5: memref<2x128xf32, #tpu.memory_space<vmem>>) attributes {dimension_semantics = [#tpu.dimension_semantics<arbitrary>, #tpu.dimension_semantics<arbitrary>], iteration_bounds = array<i64: 2, 1>, scalar_prefetch = 0 : i64, scratch_operands = 1 : i64, tpu.core_type = #tpu.core_type<tc>, window_params = [{transform_indices = @transform_0, window_bounds = array<i64: 1, 4, 2, 128>}, {transform_indices = @transform_1, window_bounds = array<i64: 1, 2, 128>}, {pipeline_mode = #tpu.pipeline_mode<synchronous>, transform_indices = @transform_2, window_bounds = array<i64: 1, 1>}]} {
    %c0_i32 = arith.constant 0 : i32
    %0 = arith.cmpi eq, %arg0, %c0_i32 : i32
    %c0_i32_0 = arith.constant 0 : i32
    %1 = arith.cmpi eq, %arg1, %c0_i32_0 : i32
    %2 = arith.andi %0, %1 : i1
    %3 = arith.extui %2 : i1 to i32
    %c0_i32_1 = arith.constant 0 : i32
    %4 = arith.cmpi ne, %3, %c0_i32_1 : i32
    scf.if %4 {
      %cst_22 = arith.constant 0.000000e+00 : f32
      %41 = vector.broadcast %cst_22 : f32 to vector<2x128xf32>
      %c0_23 = arith.constant 0 : index
      %c0_24 = arith.constant 0 : index
      %42 = vector.load %arg5[%c0_23, %c0_24] : memref<2x128xf32, #tpu.memory_space<vmem>>, vector<2x128xf32>
      tpu.vector_store %arg5[%c0_23, %c0_24], %41 {strides = array<i32>} : memref<2x128xf32, #tpu.memory_space<vmem>>, vector<2x128xf32>,
    } else {
    }
    %c0 = arith.constant 0 : index
    %c0_2 = arith.constant 0 : index
    %c0_3 = arith.constant 0 : index
    %c0_4 = arith.constant 0 : index
    %5 = vector.load %arg2[%c0, %c0_2, %c0_3, %c0_4] : memref<1x4x2x128xf32, #tpu.memory_space<vmem>>, vector<1x4x2x128xf32>
    %6 = vector.shape_cast %5 : vector<1x4x2x128xf32> to vector<4x2x128xf32>
    %c0_5 = arith.constant 0 : index
    %c0_6 = arith.constant 0 : index
    %c0_7 = arith.constant 0 : index
    %7 = vector.load %arg3[%c0_5, %c0_6, %c0_7] : memref<1x2x128xi32, #tpu.memory_space<vmem>>, vector<1x2x128xi32>
    %8 = vector.shape_cast %7 : vector<1x2x128xi32> to vector<2x128xi32>
    %9 = tpu.iota {dimensions = array<i32: 0>} : vector<4x2x128xi32>
    %10 = vector.shape_cast %8 : vector<2x128xi32> to vector<1x2x128xi32>
    %11 = vector.broadcast %10 : vector<1x2x128xi32> to vector<4x2x128xi32>
    %12 = arith.cmpi eq, %9, %11 : vector<4x2x128xi32>
    %cst = arith.constant 0.000000e+00 : f32
    %13 = vector.broadcast %cst : f32 to vector<4x2x128xf32>
    %14 = arith.select %12, %6, %13 : vector<4x2x128xi1>, vector<4x2x128xf32>
    %cst_8 = arith.constant dense<0.000000e+00> : vector<2x128xf32>
    %15 = vector.multi_reduction <add>, %14, %cst_8 [0] : vector<4x2x128xf32> to vector<2x128xf32>
    %cst_9 = arith.constant dense<0.000000e+00> : vector<2x128xf32>
    %16 = vector.multi_reduction <add>, %6, %cst_9 [0] : vector<4x2x128xf32> to vector<2x128xf32>
    %cst_10 = arith.constant 0.999986648 : f32
    %17 = vector.broadcast %cst_10 : f32 to vector<2x128xf32>
    %18 = arith.mulf %17, %15 : vector<2x128xf32>
    %cst_11 = arith.constant 3.33333332E-6 : f32
    %19 = vector.broadcast %cst_11 : f32 to vector<2x128xf32>
    %20 = arith.mulf %19, %16 : vector<2x128xf32>
    %21 = arith.addf %18, %20 : vector<2x128xf32>
    %cst_12 = arith.constant 9.99999974E-6 : f32
    %22 = vector.broadcast %cst_12 : f32 to vector<2x128xf32>
    %23 = arith.addf %21, %22 : vector<2x128xf32>
    %24 = math.log %23 : vector<2x128xf32>
    %cst_13 = arith.constant 1.000000e+00 : f32
    %25 = vector.broadcast %cst_13 : f32 to vector<2x128xf32>
    %26 = arith.subf %25, %23 : vector<2x128xf32>
    %cst_14 = arith.constant 1.000000e+00 : f32
    %27 = vector.broadcast %cst_14 : f32 to vector<2x128xf32>
    %28 = arith.mulf %27, %26 : vector<2x128xf32>
    %29 = arith.mulf %28, %26 : vector<2x128xf32>
    %30 = arith.mulf %29, %24 : vector<2x128xf32>
    %cst_15 = arith.constant 0.000000e+00 : f32
    %31 = vector.broadcast %cst_15 : f32 to vector<2x128xf32>
    %32 = arith.subf %31, %30 : vector<2x128xf32>
    %c0_16 = arith.constant 0 : index
    %c0_17 = arith.constant 0 : index
    %33 = vector.load %arg5[%c0_16, %c0_17] : memref<2x128xf32, #tpu.memory_space<vmem>>, vector<2x128xf32>
    %34 = arith.addf %33, %32 : vector<2x128xf32>
    %c0_18 = arith.constant 0 : index
    %c0_19 = arith.constant 0 : index
    %35 = vector.load %arg5[%c0_18, %c0_19] : memref<2x128xf32, #tpu.memory_space<vmem>>, vector<2x128xf32>
    tpu.vector_store %arg5[%c0_18, %c0_19], %34 {strides = array<i32>} : memref<2x128xf32, #tpu.memory_space<vmem>>, vector<2x128xf32>,
    %c1_i32 = arith.constant 1 : i32
    %36 = arith.cmpi eq, %arg0, %c1_i32 : i32
    %c0_i32_20 = arith.constant 0 : i32
    %37 = arith.cmpi eq, %arg1, %c0_i32_20 : i32
    %38 = arith.andi %36, %37 : i1
    %39 = arith.extui %38 : i1 to i32
    %c0_i32_21 = arith.constant 0 : i32
    %40 = arith.cmpi ne, %39, %c0_i32_21 : i32
    scf.if %40 {
      %c0_22 = arith.constant 0 : index
      %c0_23 = arith.constant 0 : index
      %41 = vector.load %arg5[%c0_22, %c0_23] : memref<2x128xf32, #tpu.memory_space<vmem>>, vector<2x128xf32>
      %42 = vector.shape_cast %41 : vector<2x128xf32> to vector<1x2x128xf32>
      %cst_24 = arith.constant dense<0.000000e+00> : vector<1xf32>
      %43 = vector.multi_reduction <add>, %42, %cst_24 [1, 2] : vector<1x2x128xf32> to vector<1xf32>
      %44 = vector.shape_cast %43 : vector<1xf32> to vector<1x1x1xf32>
      %45 = vector.extract %44[0, 0, 0] : f32 from vector<1x1x1xf32>
      %46 = vector.broadcast %45 : f32 to vector<1x1xf32>
      %cst_25 = arith.constant 0.001953125 : f32
      %47 = vector.broadcast %cst_25 : f32 to vector<1x1xf32>
      %48 = arith.mulf %46, %47 : vector<1x1xf32>
      %c0_26 = arith.constant 0 : index
      %c0_27 = arith.constant 0 : index
      %49 = vector.load %arg4[%c0_26, %c0_27] : memref<1x1xf32, #tpu.memory_space<vmem>>, vector<1x1xf32>
      tpu.vector_store %arg4[%c0_26, %c0_27], %48 {strides = array<i32>} : memref<1x1xf32, #tpu.memory_space<vmem>>, vector<1x1xf32>,
    } else {
    }
    return
  }
  func.func @transform_0(%arg0: i32, %arg1: i32) -> (i32, i32, i32, i32) {
    %c0_i32 = arith.constant 0 : i32
    %c0_i32_0 = arith.constant 0 : i32
    %c0_i32_1 = arith.constant 0 : i32
    return %arg0, %c0_i32, %arg1, %c0_i32_0 : i32, i32, i32, i32
  }
  func.func @transform_1(%arg0: i32, %arg1: i32) -> (i32, i32, i32) {
    %c0_i32 = arith.constant 0 : i32
    %c0_i32_0 = arith.constant 0 : i32
    return %arg0, %arg1, %c0_i32 : i32, i32, i32
  }
  func.func @transform_2(%arg0: i32, %arg1: i32) -> (i32, i32) {
    %c0_i32 = arith.constant 0 : i32
    %c0_i32_0 = arith.constant 0 : i32
    %c0_i32_1 = arith.constant 0 : i32
    return %c0_i32, %c0_i32_0 : i32, i32
  }
}

</mosaic_0001>

<bundles_post_ra>
// kernel: _lambda_.1
= control target key start
LH: loop header
LB: loop body
LE: loop exit
PB: predicated region body
PF: predicated region fallthrough
CT: control target
= control target key end

     0   :  { %7 = vsyncpa [#allocation4], 0  ;;  %s452_s9 = smov 0   ;;  %s454_s10 = smov 0   ;;  %s508_s0 = inlined_call_operand.vmem [shape: f32[2,4,2,128], index: 0, kind: input, shape index: {}]   ;;  %s509_s1 = inlined_call_operand.vmem [shape: s32[2,2,128], index: 1, kind: input, shape index: {}]   ;;  %s510_s2 = inlined_call_operand.hbm [shape: f32[1,1], index: 2, kind: output, shape index: {}]  }
   0x1   :  { %s456_s11 = smov 0  }
   0x2 LB: > { %s327_s12 = sadd.s32 4294967295, %s433_s11   ;;  %s25_s13 = sadd.s32 1, %s429_s10  ;;  %s433_s11 = sphi %s456_s11, %s13_s11   ;;  %s429_s10 = sphi %s454_s10, %s512_s10   ;;  %s425_s9 = sphi %s452_s9, %s511_s9  }
   0x3   : > { %p27_p0 = scmp.ge.s32.totalorder %s25_s13, 2  ;;  %p330_p1 = scmp.ge.s32.totalorder %s433_s11, 1 }
   0x4   : > { %p139_p2 = scmp.lt.s32.totalorder %s433_s11, 3 }
   0x5   : > { %s514_s13 = smov (%p27_p0, %s25_s13), 0 }
   0x6   : > { %p140_p3 = pnand %p330_p1, %p139_p2 }
   0x7   : > { %p166_p4 = scmp.lt.s32.totalorder (!%p140_p3), %s425_s9, 1  ;;  %p181_p5 = scmp.eq.s32.totalorder (!%p140_p3), %s425_s9, 0 }
   0x8   : > { %143 = sbr.rel (%p140_p3) target bundleno = 249 (0xf9), region = 28 }
   0xd   : > { %s167_s14 = scalar_select %p166_p4, %s425_s9, 1  ;;  %v435_v0 = vmov (%p181_p5), 0.0  }
   0xe   : > { %186 = sbr.rel (!%p181_p5) target bundleno = 19 (0x13), region = 32  ;;  %187 = vst [vmem:[#allocation2] sm:$0x3] (%p181_p5), %v435_v0 }
   0xf   : > { %s340_s15 = sshll.u32 %s167_s14, 3  ;;  %s333_s16 = sshll.u32 %s167_s14, 1 }
  0x10   : > { %s173_s19 = scalar_lea.vmem %s508_s0, %s340_s15  ;;  %s180_s22 = scalar_lea.vmem %s509_s1, %s333_s16 }
  0x13 PF: > { %v188_v1 = vld [vmem:[%s173_s19] sm:$0x3]  ;;  %v189_v2 = vld [vmem:[%s173_s19 + $0x2] sm:$0x3]  ;;  %v190_v3 = vld [vmem:[%s173_s19 + $0x4] sm:$0x3] }
  0x14   : > { %v191_v4 = vld [vmem:[%s173_s19 + $0x6] sm:$0x3]  ;;  %v192_v5 = vld [vmem:[%s180_s22] sm:$0x3]  ;;  %vm201_vm0 = vcmask 1041408   ;;  %p229_p6 = scmp.eq.s32.totalorder %s425_s9, 1 }
  0x15   : > { %vm193_vm1 = vcmp.eq.s32.totalorder %v192_v5, 0  ;;  %vm194_vm2 = vcmp.eq.s32.totalorder %v192_v5, 1  ;;  %vm195_vm3 = vcmp.eq.s32.totalorder %v192_v5, 2  ;;  %vm196_vm4 = vcmp.eq.s32.totalorder %v192_v5, 3  ;;  %v226_v33 = vld [vmem:[#allocation2] sm:$0x3] }
  0x16   : > { %v197_v6 = vsel %vm193_vm1, %v188_v1, 0.0  ;;  %v198_v7 = vsel %vm194_vm2, %v189_v2, 0.0  ;;  %v199_v8 = vsel %vm195_vm3, %v190_v3, 0.0  ;;  %v200_v9 = vsel %vm196_vm4, %v191_v4, 0.0 }
  0x17   : > { %v202_v10 = vsel %vm201_vm0, %v197_v6, 0.0  ;;  %v203_v11 = vsel %vm201_vm0, %v198_v7, 0.0  ;;  %v205_v12 = vsel %vm201_vm0, %v199_v8, 0.0  ;;  %v209_v14 = vsel %vm201_vm0, %v188_v1, 0.0 }
  0x18   : > { %v204_v13 = vadd.f32 %v203_v11, %v202_v10  ;;  %v210_v15 = vsel %vm201_vm0, %v189_v2, 0.0  ;;  %v212_v16 = vsel %vm201_vm0, %v190_v3, 0.0  ;;  %v207_v17 = vsel %vm201_vm0, %v200_v9, 0.0 }
  0x19   : > { %v211_v18 = vadd.f32 %v210_v15, %v209_v14  ;;  %v214_v20 = vsel %vm201_vm0, %v191_v4, 0.0  ;;  %vm247_vm5 = vcmask (%p229_p6), 0  }
  0x1a   : > { %v206_v19 = vadd.f32 %v205_v12, %v204_v13 }
  0x1b   : > { %v213_v21 = vadd.f32 %v212_v16, %v211_v18 }
  0x1c   : > { %v208_v22 = vadd.f32 %v207_v17, %v206_v19 }
  0x1d   : > { %v215_v23 = vadd.f32 %v214_v20, %v213_v21 }
  0x1e   : > { %v216_v24 = vmul.f32 0.99998665, %v208_v22 }
  0x1f   : > { %v217_v25 = vmul.f32 3.3333333e-06, %v215_v23 }
  0x21   : > { %v218_v26 = vadd.f32 %v217_v25, %v216_v24 }
  0x23   : > { %v219_v27 = vadd.f32 1e-05, %v218_v26 }
  0x25   : > { %377 = vlog2.f32 %v219_v27  ;;  %v222_v28 = vsub.f32 1.0, %v219_v27 }
  0x27   : > { %v223_v29 = vmul.f32 %v222_v28, %v222_v28 }
  0x2b   : > { %v378_v30 = vpop.eup %377 }
  0x2c   : > { %v221_v31 = vmul.f32 0.6931472, %v378_v30 }
  0x2e   : > { %v224_v32 = vmul.f32 %v223_v29, %v221_v31 }
  0x30   : > { %v225_v34 = vsub.f32 0.0, %v224_v32  ;;  %233 = sbr.rel (!%p229_p6) target bundleno = 243 (0xf3), region = 36 }
  0x32   : > { %v227_v35 = vadd.f32 %v226_v33, %v225_v34 }
  0x34   : > { %228 = vst [vmem:[#allocation2] sm:$0x3] %v227_v35 }
  0x3b   : > { %v234_v36 = vld [vmem:[#allocation2] sm:$0x3] }
  0x3c   : > { %v235_v37 = vsel %vm201_vm0, %v234_v36, 0.0 }
  0x3d   : > { %236 = vadd.xlane.f32.xlu0 %v235_v37 }
  0xb0   : > { %v237_v38 = vpop.xlane.xlu0 %236 }
  0xb1   : > { %v238_v39 = vrot.slane %v237_v38, 4 }
  0xb3   : > { %v239_v40 = vadd.f32 %v238_v39, %v237_v38 }
  0xb5   : > { %v240_v41 = vrot.slane %v239_v40, 2 }
  0xb7   : > { %v241_v42 = vadd.f32 %v240_v41, %v239_v40 }
  0xb9   : > { %v242_v43 = vrot.slane %v241_v42, 1 }
  0xbb   : > { %v243_v44 = vadd.f32 %v242_v43, %v241_v42 }
  0xbd   : > { %343 = vpush %v243_v44 }
  0xee   : > { %s344_s23 = spop %343 }
  0xef   : > { %v245_v45 = vstv %s344_s23 }
  0xf0   : > { %v246_v46 = vmul.f32 0.001953125, %v245_v45 }
  0xf2   : > { %248 = vst.msk [vmem:[#allocation3] sm:$0x1] %vm247_vm5, %v246_v46 }
  0xf3 PF: > { %p349_p7 = scmp.eq.s32.totalorder %s327_s12, 1  ;;  %s257_s26 = sshll.u32 %s510_s2, 4  ;;  %s258_s26 = int_to_ptr.hbm [resolvable:$true] %s257_s26 }
  0xf4   : > { %s436_s27 = smov [#allocation3]  }
  0xf5   : > { %s255_s28 = sshll.u32 %s436_s27, 4  ;;  %s256_s28 = int_to_ptr.vmem [resolvable:$true] %s255_s28 }
  0xf6   : > { %346 = dma.vmem_to_hbm [thread:$0]  (%p349_p7), %s256_s28, 16, %s258_s26, [#allocation4]  }
  0xf7   : > { %420 = dma.done.wait (%p349_p7), [#allocation4], 16  }
  0xf8   : > { %422 = vsyncadd (%p349_p7), [#allocation4], 4294967280 }
  0xf9 PF: > { %s13_s11 = sadd.s32 1, %s433_s11   ;;  %s511_s9 = smov %s429_s10 }
  0xfa   : > { %p10_p8 = scmp.ge.s32.totalorder %s13_s11, 4   ;;  %s512_s10 = smov %s514_s13 }
  0xfc   :  { %12 = sbr.rel (!%p10_p8) target bundleno = 2 (0x2), region = 66 }
 0x101   :  { %271 = vsyncpa [#allocation4], 1 }
 0x102   :  { %273 = vsyncpa [#allocation4 + $0x1], 1 }

</bundles_post_ra>
